<compile_context>
chip_gen: v5e
topology: v5e:2x2
jax: 0.10.0
libtpu: 0.0.40
codegen_flags: <defaults>
</compile_context>

<pallas_src>
import functools

import jax
import jax.numpy as jnp
from jax.experimental import pallas as pl
from jax.experimental.pallas import tpu as pltpu

DROPOUT_P = 0.5
TRAINING = True  # torch modules default to training mode


# ---------------------------------------------------------------------------
# In-kernel multi-head attention body (shared by all kernel variants).
# ---------------------------------------------------------------------------
def _multihead_attention(x_ref, w_qkv_ref, *, heads, dim_head, scale):
    """x @ W_qkv followed by per-head softmax attention.

    Returns the merged 'b n (h d)' attention output as an (N, heads*dim_head)
    f32 array that never leaves VMEM.
    """
    inner = heads * dim_head
    x = x_ref[...]
    # Native-dtype MXU operands, f32 accumulation.
    qkv = jnp.dot(x, w_qkv_ref[...], preferred_element_type=jnp.float32)
    qkv = qkv.astype(x.dtype)
    outs = []
    for h in range(heads):
        lo = h * dim_head
        q = qkv[:, lo:lo + dim_head] * scale               # scale folded into q
        k = qkv[:, inner + lo:inner + lo + dim_head]
        v = qkv[:, 2 * inner + lo:2 * inner + lo + dim_head]
        # Contract over d directly: no explicit k.T / XLU transpose.
        dots = jax.lax.dot_general(q, k, (((1,), (1,)), ((), ())),
                                   preferred_element_type=jnp.float32)
        dots = dots - jnp.max(dots, axis=-1, keepdims=True)
        p = jnp.exp(dots)
        denom = jnp.sum(p, axis=-1, keepdims=True)
        inv = pl.reciprocal(denom, approx=True)             # EUP slot
        inv = inv * (2.0 - denom * inv)                     # one Newton step -> f32 accurate
        attn = p * inv
        outs.append(jnp.dot(attn.astype(v.dtype), v,
                            preferred_element_type=jnp.float32))
    # Merged head layout assembled in VMEM (no HBM transpose pass).
    return jnp.concatenate(outs, axis=-1)                   # (N, inner), f32


# ---------------------------------------------------------------------------
# Kernel variants.
# ---------------------------------------------------------------------------
def _attn_proj_dropout_kernel(x_ref, w_qkv_ref, w_out_ref, b_ref, mask_ref,
                              o_ref, *, heads, dim_head, scale, keep_scale):
    out = _multihead_attention(x_ref, w_qkv_ref, heads=heads,
                               dim_head=dim_head, scale=scale)
    y = jnp.dot(out.astype(x_ref.dtype), w_out_ref[...],
                preferred_element_type=jnp.float32)
    y = y + b_ref[...].astype(jnp.float32)
    # Inverted dropout: keep mask in {0,1}; 1/(1-p) scaling done in-kernel.
    y = y * (mask_ref[...].astype(jnp.float32) * keep_scale)
    o_ref[...] = y.astype(o_ref.dtype)


def _attn_proj_kernel(x_ref, w_qkv_ref, w_out_ref, b_ref, o_ref,
                      *, heads, dim_head, scale):
    out = _multihead_attention(x_ref, w_qkv_ref, heads=heads,
                               dim_head=dim_head, scale=scale)
    y = jnp.dot(out.astype(x_ref.dtype), w_out_ref[...],
                preferred_element_type=jnp.float32)
    y = y + b_ref[...].astype(jnp.float32)
    o_ref[...] = y.astype(o_ref.dtype)


def _attn_identity_kernel(x_ref, w_qkv_ref, o_ref, *, heads, dim_head, scale):
    out = _multihead_attention(x_ref, w_qkv_ref, heads=heads,
                               dim_head=dim_head, scale=scale)
    o_ref[...] = out.astype(o_ref.dtype)


# ---------------------------------------------------------------------------
# Module forward.
# ---------------------------------------------------------------------------
def attention_forward(x, w_qkv, w_out, b_out, *, heads, dim_head,
                      dropout_p=DROPOUT_P, training=TRAINING, dropout_key=None):
    """x: (B, N, dim). w_qkv: (dim, 3*heads*dim_head) (torch W.T, no bias),
    w_out: (heads*dim_head, dim), b_out: (dim,). Returns (B, N, dim)."""
    B, N, dim = x.shape
    inner = heads * dim_head
    scale = float(dim_head) ** -0.5
    M = B * N
    itemsize = jnp.dtype(x.dtype).itemsize
    assert N % 8 == 0, "sequence length must be a multiple of the 8-row sublane tile"

    x2d = x.reshape(M, dim)
    project_out = not (heads == 1 and dim_head == dim)

    attn_flops = 2 * M * dim * 3 * inner + 4 * B * heads * N * N * dim_head
    attn_transc = B * heads * N * (N + 1)
    common_params = pltpu.CompilerParams(dimension_semantics=("parallel",))

    if not project_out:
        kernel = functools.partial(_attn_identity_kernel, heads=heads,
                                   dim_head=dim_head, scale=scale)
        out = pl.pallas_call(
            kernel,
            out_shape=jax.ShapeDtypeStruct((M, inner), x.dtype),
            grid=(B,),
            in_specs=[pl.BlockSpec((N, dim), lambda b: (b, 0)),
                      pl.BlockSpec((dim, 3 * inner), lambda b: (0, 0))],
            out_specs=pl.BlockSpec((N, inner), lambda b: (b, 0)),
            compiler_params=common_params,
            cost_estimate=pl.CostEstimate(
                flops=attn_flops, transcendentals=attn_transc,
                bytes_accessed=itemsize * (M * dim + dim * 3 * inner + M * inner)),
        )(x2d, w_qkv)
        return out.reshape(B, N, inner)

    proj_flops = attn_flops + 2 * M * inner * dim
    b_out2d = b_out.reshape(1, dim)

    if training and dropout_p > 0.0:
        if dropout_key is None:
            raise ValueError("dropout_key is required in training mode")
        keep = jax.random.bernoulli(dropout_key, 1.0 - dropout_p, (M, dim))
        mask = keep.astype(x.dtype)
        keep_scale = 1.0 / (1.0 - dropout_p)
        kernel = functools.partial(_attn_proj_dropout_kernel, heads=heads,
                                   dim_head=dim_head, scale=scale,
                                   keep_scale=keep_scale)
        bytes_accessed = itemsize * (M * dim + dim * 3 * inner + inner * dim
                                     + dim + M * dim + M * dim)
        y = pl.pallas_call(
            kernel,
            out_shape=jax.ShapeDtypeStruct((M, dim), x.dtype),
            grid=(B,),
            in_specs=[
                pl.BlockSpec((N, dim), lambda b: (b, 0)),          # x rows of batch b
                pl.BlockSpec((dim, 3 * inner), lambda b: (0, 0)),  # W_qkv (resident)
                pl.BlockSpec((inner, dim), lambda b: (0, 0)),      # W_out (resident)
                pl.BlockSpec((1, dim), lambda b: (0, 0)),          # b_out
                pl.BlockSpec((N, dim), lambda b: (b, 0)),          # dropout keep mask
            ],
            out_specs=pl.BlockSpec((N, dim), lambda b: (b, 0)),
            compiler_params=common_params,
            cost_estimate=pl.CostEstimate(
                flops=proj_flops, transcendentals=attn_transc,
                bytes_accessed=bytes_accessed),
        )(x2d, w_qkv, w_out, b_out2d, mask)
    else:
        kernel = functools.partial(_attn_proj_kernel, heads=heads,
                                   dim_head=dim_head, scale=scale)
        bytes_accessed = itemsize * (M * dim + dim * 3 * inner + inner * dim
                                     + dim + M * dim)
        y = pl.pallas_call(
            kernel,
            out_shape=jax.ShapeDtypeStruct((M, dim), x.dtype),
            grid=(B,),
            in_specs=[
                pl.BlockSpec((N, dim), lambda b: (b, 0)),
                pl.BlockSpec((dim, 3 * inner), lambda b: (0, 0)),
                pl.BlockSpec((inner, dim), lambda b: (0, 0)),
                pl.BlockSpec((1, dim), lambda b: (0, 0)),
            ],
            out_specs=pl.BlockSpec((N, dim), lambda b: (b, 0)),
            compiler_params=common_params,
            cost_estimate=pl.CostEstimate(
                flops=proj_flops, transcendentals=attn_transc,
                bytes_accessed=bytes_accessed),
        )(x2d, w_qkv, w_out, b_out2d)

    return y.reshape(B, N, dim)


# ---------------------------------------------------------------------------
# Pure-JAX reference (eval mode) for correctness checking.
# ---------------------------------------------------------------------------
def _reference(x, w_qkv, w_out, b_out, *, heads, dim_head):
    B, N, dim = x.shape
    scale = float(dim_head) ** -0.5
    qkv = x @ w_qkv
    q, k, v = jnp.split(qkv, 3, axis=-1)

    def to_h(t):
        return t.reshape(B, N, heads, dim_head).transpose(0, 2, 1, 3)

    q, k, v = map(to_h, (q, k, v))
    dots = jnp.einsum('bhid,bhjd->bhij', q, k) * scale
    attn = jax.nn.softmax(dots, axis=-1)
    out = jnp.einsum('bhij,bhjd->bhid', attn, v)
    out = out.transpose(0, 2, 1, 3).reshape(B, N, heads * dim_head)
    return out @ w_out + b_out


if __name__ == "__main__":
    key = jax.random.PRNGKey(0)
    k_x, k_qkv, k_wout, k_bout, k_drop = jax.random.split(key, 5)

    batch, seq, dim, heads, dim_head = 2, 8, 32, 4, 16
    inner = heads * dim_head

    x = jax.random.normal(k_x, (batch, seq, dim), dtype=jnp.float32)

    # Deterministic stand-ins for nn.Linear's kaiming-uniform init.
    bound_qkv = 1.0 / (dim ** 0.5)
    w_qkv = jax.random.uniform(k_qkv, (dim, 3 * inner), jnp.float32,
                               -bound_qkv, bound_qkv)
    bound_out = 1.0 / (inner ** 0.5)
    w_out = jax.random.uniform(k_wout, (inner, dim), jnp.float32,
                               -bound_out, bound_out)
    b_out = jax.random.uniform(k_bout, (dim,), jnp.float32,
                               -bound_out, bound_out)

    # Training mode (matches torch default): dropout active.
    out_train = attention_forward(x, w_qkv, w_out, b_out,
                                  heads=heads, dim_head=dim_head,
                                  dropout_p=0.5, training=True,
                                  dropout_key=k_drop)
    jax.block_until_ready(out_train)
    assert out_train.shape == (batch, seq, dim)
    assert bool(jnp.all(jnp.isfinite(out_train)))

    # Eval mode: dropout is the identity; compare against pure-JAX reference.
    # Tolerance 1e-4: the approx EUP reciprocal + one Newton step is ~f32
    # accurate but not bit-identical to an exact divide.
    out_eval = attention_forward(x, w_qkv, w_out, b_out,
                                 heads=heads, dim_head=dim_head,
                                 dropout_p=0.5, training=False)
    ref = _reference(x, w_qkv, w_out, b_out, heads=heads, dim_head=dim_head)
    jax.block_until_ready(out_eval)
    assert jnp.allclose(out_eval, ref, atol=1e-4, rtol=1e-4)

    print("KERNEL_OK")
</pallas_src>

<mosaic_0001>
module attributes {stable_mosaic.version = 11 : i64} {
  func.func @_attn_proj_dropout_kernel(%arg0: i32, %arg1: memref<8x32xf32, #tpu.memory_space<vmem>>, %arg2: memref<32x192xf32, #tpu.memory_space<vmem>>, %arg3: memref<64x32xf32, #tpu.memory_space<vmem>>, %arg4: memref<1x32xf32, #tpu.memory_space<vmem>>, %arg5: memref<8x32xf32, #tpu.memory_space<vmem>>, %arg6: memref<8x32xf32, #tpu.memory_space<vmem>>) attributes {dimension_semantics = [#tpu.dimension_semantics<parallel>], iteration_bounds = array<i64: 2>, scalar_prefetch = 0 : i64, scratch_operands = 0 : i64, tpu.core_type = #tpu.core_type<tc>, window_params = [{transform_indices = @transform_0, window_bounds = array<i64: 8, 32>}, {pipeline_mode = #tpu.pipeline_mode<synchronous>, transform_indices = @transform_1, window_bounds = array<i64: 32, 192>}, {pipeline_mode = #tpu.pipeline_mode<synchronous>, transform_indices = @transform_2, window_bounds = array<i64: 64, 32>}, {pipeline_mode = #tpu.pipeline_mode<synchronous>, transform_indices = @transform_3, window_bounds = array<i64: 1, 32>}, {transform_indices = @transform_4, window_bounds = array<i64: 8, 32>}, {transform_indices = @transform_5, window_bounds = array<i64: 8, 32>}]} {
    %c0 = arith.constant 0 : index
    %c0_0 = arith.constant 0 : index
    %0 = vector.load %arg1[%c0, %c0_0] : memref<8x32xf32, #tpu.memory_space<vmem>>, vector<8x32xf32>
    %c0_1 = arith.constant 0 : index
    %c0_2 = arith.constant 0 : index
    %1 = vector.load %arg2[%c0_1, %c0_2] : memref<32x192xf32, #tpu.memory_space<vmem>>, vector<32x192xf32>
    %cst = arith.constant dense<0.000000e+00> : vector<8x192xf32>
    %2 = tpu.matmul %0, %1, %cst {dimension_numbers = #tpu.dot_dimension_numbers<[1], [0], [0], [1], [0, 0, 1, 1], [], []>} : vector<8x32xf32>, vector<32x192xf32>, vector<8x192xf32> -> vector<8x192xf32>
    %3 = vector.extract_strided_slice %2 {offsets = [0, 0], sizes = [8, 16], strides = [1, 1]} : vector<8x192xf32> to vector<8x16xf32>
    %cst_3 = arith.constant 2.500000e-01 : f32
    %4 = vector.broadcast %cst_3 : f32 to vector<8x16xf32>
    %5 = arith.mulf %3, %4 : vector<8x16xf32>
    %6 = vector.extract_strided_slice %2 {offsets = [0, 64], sizes = [8, 16], strides = [1, 1]} : vector<8x192xf32> to vector<8x16xf32>
    %7 = vector.extract_strided_slice %2 {offsets = [0, 128], sizes = [8, 16], strides = [1, 1]} : vector<8x192xf32> to vector<8x16xf32>
    %cst_4 = arith.constant dense<0.000000e+00> : vector<8x8xf32>
    %8 = tpu.matmul %5, %6, %cst_4 {dimension_numbers = #tpu.dot_dimension_numbers<[1], [1], [0], [0], [0, 0, 1, 0], [], []>} : vector<8x16xf32>, vector<8x16xf32>, vector<8x8xf32> -> vector<8x8xf32>
    %cst_5 = arith.constant dense<0xFF800000> : vector<8xf32>
    %9 = vector.multi_reduction <maximumf>, %8, %cst_5 [1] : vector<8x8xf32> to vector<8xf32>
    %10 = vector.shape_cast %9 : vector<8xf32> to vector<8x1xf32>
    %11 = vector.broadcast %10 : vector<8x1xf32> to vector<8x8xf32>
    %12 = arith.subf %8, %11 : vector<8x8xf32>
    %13 = math.exp %12 : vector<8x8xf32>
    %cst_6 = arith.constant dense<0.000000e+00> : vector<8xf32>
    %14 = vector.multi_reduction <add>, %13, %cst_6 [1] : vector<8x8xf32> to vector<8xf32>
    %15 = vector.shape_cast %14 : vector<8xf32> to vector<8x1xf32>
    %16 = tpu.reciprocal %15 {approx = true} : vector<8x1xf32> -> vector<8x1xf32>
    %17 = arith.mulf %15, %16 : vector<8x1xf32>
    %cst_7 = arith.constant 2.000000e+00 : f32
    %18 = vector.broadcast %cst_7 : f32 to vector<8x1xf32>
    %19 = arith.subf %18, %17 : vector<8x1xf32>
    %20 = arith.mulf %16, %19 : vector<8x1xf32>
    %21 = vector.broadcast %20 : vector<8x1xf32> to vector<8x8xf32>
    %22 = arith.mulf %13, %21 : vector<8x8xf32>
    %cst_8 = arith.constant dense<0.000000e+00> : vector<8x16xf32>
    %23 = tpu.matmul %22, %7, %cst_8 {dimension_numbers = #tpu.dot_dimension_numbers<[1], [0], [0], [1], [0, 0, 1, 1], [], []>} : vector<8x8xf32>, vector<8x16xf32>, vector<8x16xf32> -> vector<8x16xf32>
    %24 = vector.extract_strided_slice %2 {offsets = [0, 16], sizes = [8, 16], strides = [1, 1]} : vector<8x192xf32> to vector<8x16xf32>
    %cst_9 = arith.constant 2.500000e-01 : f32
    %25 = vector.broadcast %cst_9 : f32 to vector<8x16xf32>
    %26 = arith.mulf %24, %25 : vector<8x16xf32>
    %27 = vector.extract_strided_slice %2 {offsets = [0, 80], sizes = [8, 16], strides = [1, 1]} : vector<8x192xf32> to vector<8x16xf32>
    %28 = vector.extract_strided_slice %2 {offsets = [0, 144], sizes = [8, 16], strides = [1, 1]} : vector<8x192xf32> to vector<8x16xf32>
    %cst_10 = arith.constant dense<0.000000e+00> : vector<8x8xf32>
    %29 = tpu.matmul %26, %27, %cst_10 {dimension_numbers = #tpu.dot_dimension_numbers<[1], [1], [0], [0], [0, 0, 1, 0], [], []>} : vector<8x16xf32>, vector<8x16xf32>, vector<8x8xf32> -> vector<8x8xf32>
    %cst_11 = arith.constant dense<0xFF800000> : vector<8xf32>
    %30 = vector.multi_reduction <maximumf>, %29, %cst_11 [1] : vector<8x8xf32> to vector<8xf32>
    %31 = vector.shape_cast %30 : vector<8xf32> to vector<8x1xf32>
    %32 = vector.broadcast %31 : vector<8x1xf32> to vector<8x8xf32>
    %33 = arith.subf %29, %32 : vector<8x8xf32>
    %34 = math.exp %33 : vector<8x8xf32>
    %cst_12 = arith.constant dense<0.000000e+00> : vector<8xf32>
    %35 = vector.multi_reduction <add>, %34, %cst_12 [1] : vector<8x8xf32> to vector<8xf32>
    %36 = vector.shape_cast %35 : vector<8xf32> to vector<8x1xf32>
    %37 = tpu.reciprocal %36 {approx = true} : vector<8x1xf32> -> vector<8x1xf32>
    %38 = arith.mulf %36, %37 : vector<8x1xf32>
    %cst_13 = arith.constant 2.000000e+00 : f32
    %39 = vector.broadcast %cst_13 : f32 to vector<8x1xf32>
    %40 = arith.subf %39, %38 : vector<8x1xf32>
    %41 = arith.mulf %37, %40 : vector<8x1xf32>
    %42 = vector.broadcast %41 : vector<8x1xf32> to vector<8x8xf32>
    %43 = arith.mulf %34, %42 : vector<8x8xf32>
    %cst_14 = arith.constant dense<0.000000e+00> : vector<8x16xf32>
    %44 = tpu.matmul %43, %28, %cst_14 {dimension_numbers = #tpu.dot_dimension_numbers<[1], [0], [0], [1], [0, 0, 1, 1], [], []>} : vector<8x8xf32>, vector<8x16xf32>, vector<8x16xf32> -> vector<8x16xf32>
    %45 = vector.extract_strided_slice %2 {offsets = [0, 32], sizes = [8, 16], strides = [1, 1]} : vector<8x192xf32> to vector<8x16xf32>
    %cst_15 = arith.constant 2.500000e-01 : f32
    %46 = vector.broadcast %cst_15 : f32 to vector<8x16xf32>
    %47 = arith.mulf %45, %46 : vector<8x16xf32>
    %48 = vector.extract_strided_slice %2 {offsets = [0, 96], sizes = [8, 16], strides = [1, 1]} : vector<8x192xf32> to vector<8x16xf32>
    %49 = vector.extract_strided_slice %2 {offsets = [0, 160], sizes = [8, 16], strides = [1, 1]} : vector<8x192xf32> to vector<8x16xf32>
    %cst_16 = arith.constant dense<0.000000e+00> : vector<8x8xf32>
    %50 = tpu.matmul %47, %48, %cst_16 {dimension_numbers = #tpu.dot_dimension_numbers<[1], [1], [0], [0], [0, 0, 1, 0], [], []>} : vector<8x16xf32>, vector<8x16xf32>, vector<8x8xf32> -> vector<8x8xf32>
    %cst_17 = arith.constant dense<0xFF800000> : vector<8xf32>
    %51 = vector.multi_reduction <maximumf>, %50, %cst_17 [1] : vector<8x8xf32> to vector<8xf32>
    %52 = vector.shape_cast %51 : vector<8xf32> to vector<8x1xf32>
    %53 = vector.broadcast %52 : vector<8x1xf32> to vector<8x8xf32>
    %54 = arith.subf %50, %53 : vector<8x8xf32>
    %55 = math.exp %54 : vector<8x8xf32>
    %cst_18 = arith.constant dense<0.000000e+00> : vector<8xf32>
    %56 = vector.multi_reduction <add>, %55, %cst_18 [1] : vector<8x8xf32> to vector<8xf32>
    %57 = vector.shape_cast %56 : vector<8xf32> to vector<8x1xf32>
    %58 = tpu.reciprocal %57 {approx = true} : vector<8x1xf32> -> vector<8x1xf32>
    %59 = arith.mulf %57, %58 : vector<8x1xf32>
    %cst_19 = arith.constant 2.000000e+00 : f32
    %60 = vector.broadcast %cst_19 : f32 to vector<8x1xf32>
    %61 = arith.subf %60, %59 : vector<8x1xf32>
    %62 = arith.mulf %58, %61 : vector<8x1xf32>
    %63 = vector.broadcast %62 : vector<8x1xf32> to vector<8x8xf32>
    %64 = arith.mulf %55, %63 : vector<8x8xf32>
    %cst_20 = arith.constant dense<0.000000e+00> : vector<8x16xf32>
    %65 = tpu.matmul %64, %49, %cst_20 {dimension_numbers = #tpu.dot_dimension_numbers<[1], [0], [0], [1], [0, 0, 1, 1], [], []>} : vector<8x8xf32>, vector<8x16xf32>, vector<8x16xf32> -> vector<8x16xf32>
    %66 = vector.extract_strided_slice %2 {offsets = [0, 48], sizes = [8, 16], strides = [1, 1]} : vector<8x192xf32> to vector<8x16xf32>
    %cst_21 = arith.constant 2.500000e-01 : f32
    %67 = vector.broadcast %cst_21 : f32 to vector<8x16xf32>
    %68 = arith.mulf %66, %67 : vector<8x16xf32>
    %69 = vector.extract_strided_slice %2 {offsets = [0, 112], sizes = [8, 16], strides = [1, 1]} : vector<8x192xf32> to vector<8x16xf32>
    %70 = vector.extract_strided_slice %2 {offsets = [0, 176], sizes = [8, 16], strides = [1, 1]} : vector<8x192xf32> to vector<8x16xf32>
    %cst_22 = arith.constant dense<0.000000e+00> : vector<8x8xf32>
    %71 = tpu.matmul %68, %69, %cst_22 {dimension_numbers = #tpu.dot_dimension_numbers<[1], [1], [0], [0], [0, 0, 1, 0], [], []>} : vector<8x16xf32>, vector<8x16xf32>, vector<8x8xf32> -> vector<8x8xf32>
    %cst_23 = arith.constant dense<0xFF800000> : vector<8xf32>
    %72 = vector.multi_reduction <maximumf>, %71, %cst_23 [1] : vector<8x8xf32> to vector<8xf32>
    %73 = vector.shape_cast %72 : vector<8xf32> to vector<8x1xf32>
    %74 = vector.broadcast %73 : vector<8x1xf32> to vector<8x8xf32>
    %75 = arith.subf %71, %74 : vector<8x8xf32>
    %76 = math.exp %75 : vector<8x8xf32>
    %cst_24 = arith.constant dense<0.000000e+00> : vector<8xf32>
    %77 = vector.multi_reduction <add>, %76, %cst_24 [1] : vector<8x8xf32> to vector<8xf32>
    %78 = vector.shape_cast %77 : vector<8xf32> to vector<8x1xf32>
    %79 = tpu.reciprocal %78 {approx = true} : vector<8x1xf32> -> vector<8x1xf32>
    %80 = arith.mulf %78, %79 : vector<8x1xf32>
    %cst_25 = arith.constant 2.000000e+00 : f32
    %81 = vector.broadcast %cst_25 : f32 to vector<8x1xf32>
    %82 = arith.subf %81, %80 : vector<8x1xf32>
    %83 = arith.mulf %79, %82 : vector<8x1xf32>
    %84 = vector.broadcast %83 : vector<8x1xf32> to vector<8x8xf32>
    %85 = arith.mulf %76, %84 : vector<8x8xf32>
    %cst_26 = arith.constant dense<0.000000e+00> : vector<8x16xf32>
    %86 = tpu.matmul %85, %70, %cst_26 {dimension_numbers = #tpu.dot_dimension_numbers<[1], [0], [0], [1], [0, 0, 1, 1], [], []>} : vector<8x8xf32>, vector<8x16xf32>, vector<8x16xf32> -> vector<8x16xf32>
    %87 = tpu.concatenate %23, %44, %65, %86 in 1 : vector<8x16xf32>, vector<8x16xf32>, vector<8x16xf32>, vector<8x16xf32> -> vector<8x64xf32>
    %c0_27 = arith.constant 0 : index
    %c0_28 = arith.constant 0 : index
    %88 = vector.load %arg3[%c0_27, %c0_28] : memref<64x32xf32, #tpu.memory_space<vmem>>, vector<64x32xf32>
    %cst_29 = arith.constant dense<0.000000e+00> : vector<8x32xf32>
    %89 = tpu.matmul %87, %88, %cst_29 {dimension_numbers = #tpu.dot_dimension_numbers<[1], [0], [0], [1], [0, 0, 1, 1], [], []>} : vector<8x64xf32>, vector<64x32xf32>, vector<8x32xf32> -> vector<8x32xf32>
    %c0_30 = arith.constant 0 : index
    %c0_31 = arith.constant 0 : index
    %90 = vector.load %arg4[%c0_30, %c0_31] : memref<1x32xf32, #tpu.memory_space<vmem>>, vector<1x32xf32>
    %91 = vector.broadcast %90 : vector<1x32xf32> to vector<8x32xf32>
    %92 = arith.addf %89, %91 : vector<8x32xf32>
    %c0_32 = arith.constant 0 : index
    %c0_33 = arith.constant 0 : index
    %93 = vector.load %arg5[%c0_32, %c0_33] : memref<8x32xf32, #tpu.memory_space<vmem>>, vector<8x32xf32>
    %cst_34 = arith.constant 2.000000e+00 : f32
    %94 = vector.broadcast %cst_34 : f32 to vector<8x32xf32>
    %95 = arith.mulf %93, %94 : vector<8x32xf32>
    %96 = arith.mulf %92, %95 : vector<8x32xf32>
    %c0_35 = arith.constant 0 : index
    %c0_36 = arith.constant 0 : index
    %97 = vector.load %arg6[%c0_35, %c0_36] : memref<8x32xf32, #tpu.memory_space<vmem>>, vector<8x32xf32>
    tpu.vector_store %arg6[%c0_35, %c0_36], %96 {strides = array<i32>} : memref<8x32xf32, #tpu.memory_space<vmem>>, vector<8x32xf32>,
    return
  }
  func.func @transform_0(%arg0: i32) -> (i32, i32) {
    %c0_i32 = arith.constant 0 : i32
    %c0_i32_0 = arith.constant 0 : i32
    return %arg0, %c0_i32 : i32, i32
  }
  func.func @transform_1(%arg0: i32) -> (i32, i32) {
    %c0_i32 = arith.constant 0 : i32
    %c0_i32_0 = arith.constant 0 : i32
    %c0_i32_1 = arith.constant 0 : i32
    return %c0_i32, %c0_i32_0 : i32, i32
  }
  func.func @transform_2(%arg0: i32) -> (i32, i32) {
    %c0_i32 = arith.constant 0 : i32
    %c0_i32_0 = arith.constant 0 : i32
    %c0_i32_1 = arith.constant 0 : i32
    return %c0_i32, %c0_i32_0 : i32, i32
  }
  func.func @transform_3(%arg0: i32) -> (i32, i32) {
    %c0_i32 = arith.constant 0 : i32
    %c0_i32_0 = arith.constant 0 : i32
    %c0_i32_1 = arith.constant 0 : i32
    return %c0_i32, %c0_i32_0 : i32, i32
  }
  func.func @transform_4(%arg0: i32) -> (i32, i32) {
    %c0_i32 = arith.constant 0 : i32
    %c0_i32_0 = arith.constant 0 : i32
    return %arg0, %c0_i32 : i32, i32
  }
  func.func @transform_5(%arg0: i32) -> (i32, i32) {
    %c0_i32 = arith.constant 0 : i32
    %c0_i32_0 = arith.constant 0 : i32
    return %arg0, %c0_i32 : i32, i32
  }
}

</mosaic_0001>

<bundles_post_ra>
// kernel: tpu_custom_call.1
= control target key start
LH: loop header
LB: loop body
LE: loop exit
PB: predicated region body
PF: predicated region fallthrough
CT: control target
= control target key end

     0   :  { %10 = vsyncpa [#allocation3], 0  ;;  %s1086_s0 = inlined_call_operand.vmem [shape: f32[16,32], index: 0, kind: input, shape index: {}]   ;;  %s1087_s1 = inlined_call_operand.vmem [shape: f32[32,192], index: 1, kind: input, shape index: {}]   ;;  %s1088_s2 = inlined_call_operand.vmem [shape: f32[64,32], index: 2, kind: input, shape index: {}]   ;;  %s1089_s3 = inlined_call_operand.vmem [shape: f32[1,32], index: 3, kind: input, shape index: {}]   ;;  %s1090_s4 = inlined_call_operand.vmem [shape: f32[16,32], index: 4, kind: input, shape index: {}]   ;;  %s1091_s5 = inlined_call_operand.hbm [shape: f32[16,32], index: 5, kind: output, shape index: {}]  }
   0x1   :  { %12 = vsyncpa [#allocation3 + $0x1], 0  ;;  %s896_s18 = smov 0   ;;  %s898_s19 = smov 0  }
   0x2   :  { %s900_s20 = smov 0   ;;  %s902_s21 = smov 0  }
   0x3 LB: > { %s917_s22 = sadd.s32 4294967295, %s857_s21   ;;  %s706_s23 = sadd.s32 4294967294, %s857_s21   ;;  %s857_s21 = sphi %s902_s21, %s1097_s21   ;;  %s853_s20 = sphi %s900_s20, %s1096_s20   ;;  %s849_s19 = sphi %s898_s19, %s1095_s19   ;;  %s845_s18 = sphi %s896_s18, %s1094_s18  }
   0x4   : > { %s921_s24 = sadd.s32 1, %s857_s21   ;;  %s140_s25 = sadd.s32 1, %s853_s20 }
   0x5   : > { %s137_s26 = ssub.s32 %s857_s21, %s921_s24  ;;  %p150_p0 = scmp.ne.s32.totalorder %s853_s20, %s849_s19 }
   0x6   : > { %p138_p1 = scmp.eq.s32.totalorder %s137_s26, 0  ;;  %p151_p2 = scmp.eq.s32.totalorder %s917_s22, 1 }
   0x7   : > { %p156_p3 = scmp.ne.s32.totalorder %s849_s19, %s845_s18  ;;  %p157_p4 = scmp.eq.s32.totalorder %s706_s23, 1 }
   0x8   : > { %s932_s27 = scalar_select %p138_p1, %s853_s20, %s140_s25  }
   0x9   : > { %p934_p5 = por %p151_p2, %p150_p0  ;;  %p938_p6 = por %p157_p4, %p156_p3 }
   0xa   : > { %p709_p7 = scmp.ge.s32.totalorder %s857_s21, 1  ;;  %p198_p8 = scmp.lt.s32.totalorder %s857_s21, 3 }
   0xc   : > { %p199_p9 = pnand %p709_p7, %p198_p8 }
   0xd   : > { %p229_p10 = scmp.lt.s32.totalorder (!%p199_p9), %s917_s22, 1  ;;  %s859_s23 = smov (!%p199_p9), 64  }
   0xe   : > { %202 = sbr.rel (%p199_p9) target bundleno = 1456 (0x5b0), region = 40  ;;  %s860_s25 = smov (!%p199_p9), 112  }
   0xf   : > { %s861_s26 = smov (!%p199_p9), 16   ;;  %s862_s30 = smov (!%p199_p9), 80  }
  0x10   : > { %s863_s6 = smov (!%p199_p9), 32   ;;  %s864_s7 = smov (!%p199_p9), 96  }
  0x13   : > { %v244_v0 = vld [vmem:[%s1087_s1 + $0x30] sm:$0xff]  ;;  %v242_v1 = vld [vmem:[%s1087_s1 + $0x20] sm:$0xff]  ;;  %s955_s11 = scalar_select %p229_p10, %s917_s22, 1  ;;  %vm246_vm0 = vcmask 261120   ;;  %vm294_vm1 = vcmask 130048   ;;  %vm320_vm2 = vcmask 64512  }
  0x14   : > { %262 = vmatpush.msra.mxu1 %v244_v0  ;;  %v240_v2 = vld [vmem:[%s1087_s1 + $0x10] sm:$0xff]  ;;  %v238_v3 = vld [vmem:[%s1087_s1] sm:$0xff]  ;;  %v245_v17 = vld [vmem:[%s1087_s1 + $0x38] sm:$0xff]  ;;  %vm577_vm3 = vcmask 392192   ;;  %vm591_vm4 = vcmask 523264  }
  0x15   : > { %s711_s14 = sshll.u32 %s955_s11, 3  ;;  %v243_v18 = vld [vmem:[%s1087_s1 + $0x28] sm:$0xff]  ;;  %v241_v19 = vld [vmem:[%s1087_s1 + $0x18] sm:$0xff] }
  0x16   : > { %263 = vmatpush.msra.mxu1 %v242_v1  ;;  %s232_s17 = scalar_lea.vmem %s1086_s0, %s711_s14  ;;  %v239_v20 = vld [vmem:[%s1087_s1 + $0x8] sm:$0xff]  ;;  %s236_s10 = scalar_lea.vmem %s1090_s4, %s711_s14 }
  0x17   : > { %v237_v4 = vld [vmem:[%s232_s17] sm:$0xff] }
  0x18   : > { %264 = vmatpush.msra.mxu1 %v240_v2 }
  0x1a   : > { %265 = vmatpush.msra.mxu1 %v238_v3 }
  0x1b   : > { %713 = vmatmul.msk.f32.vlgmr.msra.gmra.mxu1 %vm246_vm0, %v237_v4 }
  0x1c   : > { %282 = vmatpush.msrb.mxu1 %v245_v17  ;;  %v583_v17 = vld [vmem:[%s1088_s2 + $0x20] sm:$0xff] }
  0x1e   : > { %283 = vmatpush.msrb.mxu1 %v243_v18  ;;  %v582_v18 = vld [vmem:[%s1088_s2 + $0x18] sm:$0xff] }
  0x20   : > { %284 = vmatpush.msrb.mxu1 %v241_v19  ;;  %v581_v19 = vld [vmem:[%s1088_s2 + $0x10] sm:$0xff] }
  0x22   : > { %285 = vmatpush.msrb.mxu1 %v239_v20  ;;  %v580_v20 = vld [vmem:[%s1088_s2 + $0x8] sm:$0xff] }
  0x23   : > { %714 = vmatmul.msk.f32.vlgmr.msrb.gmra.mxu1 %vm246_vm0, %v237_v4 }
  0x98   : > { %v267_v5 = vpop.f32.mrf.mxu1 }
  0x99   : > { %292 = vrot.lane.b32.xlu0 %v267_v5, %s859_s23  ;;  %v290_v6 = vmul.f32 0.25, %v267_v5  ;;  %s865_s23 = smov 48  }
  0x9b   : > { %358 = vrot.lane.b32.xlu2 %v290_v6, %s860_s25 }
  0xa0   : > { %v287_v31 = vpop.f32.mrf.mxu1 }
  0xa1   : > { %353 = vmatpush.msra.mxu3 %v287_v31 }
  0xa3   : > { %497 = vrot.lane.b32.xlu2 %v267_v5, %s861_s26 }
  0xab   : > { %495 = vrot.lane.b32.xlu2 %v290_v6, %s862_s30 }
  0xb3   : > { %429 = vrot.lane.b32.xlu2 %v267_v5, %s863_s6 }
  0xbb   : > { %427 = vrot.lane.b32.xlu2 %v290_v6, %s864_s7 }
  0xf5   : > { %v359_v7 = vpop.permute.xlu2 %358 }
  0xfd   : > { %v498_v8 = vpop.permute.xlu2 %497 }
 0x105   : > { %v496_v9 = vpop.permute.xlu2 %495 }
 0x10b   : > { %v293_v10 = vpop.permute.xlu0 %292 }
 0x10c   : > { %715 = vmatpush.xpose.msk.msra.mxu2 %vm294_vm1, %v293_v10 }
 0x10d   : > { %v430_v11 = vpop.permute.xlu2 %429 }
 0x10e   : > { %721 = vmatpush.xpose.msk.msra.mxu0 %vm294_vm1, %v430_v11 }
 0x10f   : > { %716 = vmatmul.msk.f32.vlgmr.msra.gmra.mxu2 %vm294_vm1, %v290_v6 }
 0x115   : > { %v428_v12 = vpop.permute.xlu2 %427 }
 0x116   : > { %722 = vmatmul.msk.f32.vlgmr.msra.gmra.mxu0 %vm294_vm1, %v428_v12 }
 0x192   : > { %v317_v13 = vpop.f32.mrf.mxu2 }
 0x193   : > { %v321_v14 = vsel %vm320_vm2, %v317_v13, -inf  ;;  %v452_v15 = vpop.f32.mrf.mxu0 }
 0x194   : > { %322 = vmax.xlane.f32.xlu0 %v321_v14  ;;  %v455_v16 = vsel %vm320_vm2, %v452_v15, -inf  ;;  %v586_v14 = vld [vmem:[%s1088_s2 + $0x38] sm:$0xff] }
 0x195   : > { %603 = vmatpush.msrb.mxu0 %v586_v14 }
 0x19c   : > { %456 = vmax.xlane.f32.xlu0 %v455_v16  ;;  %v584_v16 = vld [vmem:[%s1088_s2 + $0x28] sm:$0xff] }
 0x207   : > { %v323_v21 = vpop.xlane.xlu0 %322 }
 0x208   : > { %v324_v22 = vsub.f32 %v317_v13, %v323_v21  ;;  %v579_v21 = vld [vmem:[%s1088_s2] sm:$0xff] }
 0x20a   : > { %v325_v23 = vmul.f32 1.442695, %v324_v22 }
 0x20c   : > { %779 = vpow2.f32 %v325_v23 }
 0x20f   : > { %v457_v24 = vpop.xlane.xlu0 %456 }
 0x210   : > { %v458_v25 = vsub.f32 %v452_v15, %v457_v24  ;;  %v585_v15 = vld [vmem:[%s1088_s2 + $0x30] sm:$0xff] }
 0x211   : > { %604 = vmatpush.msrb.mxu0 %v585_v15 }
 0x212   : > { %v780_v26 = vpop.eup %779  ;;  %v459_v27 = vmul.f32 1.442695, %v458_v25 }
 0x213   : > { %v327_v28 = vsel %vm320_vm2, %v780_v26, 0.0  ;;  %605 = vmatpush.msrb.mxu0 %v584_v16 }
 0x214   : > { %781 = vpow2.f32 %v459_v27  ;;  %328 = vadd.xlane.f32.xlu1 %v327_v28  ;;  %v615_v28 = vld [vmem:[%s236_s10] sm:$0xff]  ;;  %s815_s10 = scalar_lea.hbm %s1091_s5, 16 }
 0x215   : > { %606 = vmatpush.msrb.mxu0 %v583_v17 }
 0x217   : > { %607 = vmatpush.msrb.mxu0 %v582_v18 }
 0x219   : > { %608 = vmatpush.msrb.mxu0 %v581_v19 }
 0x21a   : > { %v992_v29 = vpop.eup %781 }
 0x21b   : > { %v461_v30 = vsel %vm320_vm2, %v992_v29, 0.0  ;;  %609 = vmatpush.msrb.mxu0 %v580_v20 }
 0x21c   : > { %462 = vadd.xlane.f32.xlu0 %v461_v30  ;;  %v616_v30 = vmul.f32 2.0, %v615_v28 }
 0x21d   : > { %610 = vmatpush.msrb.mxu0 %v579_v21 }
 0x22d   : > { %360 = vrot.lane.b32.xlu1 %v267_v5, %s865_s23 }
 0x287   : > { %v329_v32 = vpop.xlane.xlu1 %328 }
 0x288   : > { %783 = vrcp.f32 %v329_v32 }
 0x28e   : > { %v784_v33 = vpop.eup %783 }
 0x28f   : > { %v331_v34 = vmul.f32 %v784_v33, %v329_v32  ;;  %v463_v56 = vpop.xlane.xlu0 %462 }
 0x291   : > { %v332_v35 = vsub.f32 2.0, %v331_v34 }
 0x293   : > { %v333_v36 = vmul.f32 %v784_v33, %v332_v35 }
 0x295   : > { %v334_v37 = vmul.f32 %v780_v26, %v333_v36 }
 0x297   : > { %717 = vmatmul.msk.f32.vlgmr.msra.gmra.mxu3 %vm320_vm2, %v334_v37 }
 0x29f   : > { %v361_v38 = vpop.permute.xlu1 %360 }
 0x2a0   : > { %718 = vmatpush.xpose.msk.msrb.mxu3 %vm294_vm1, %v361_v38 }
 0x2a3   : > { %719 = vmatmul.msk.f32.vlgmr.msrb.gmra.mxu3 %vm294_vm1, %v359_v7 }
 0x2a4   : > { %724 = vmatpush.xpose.msk.msra.mxu3 %vm294_vm1, %v498_v8 }
 0x2ab   : > { %725 = vmatmul.msk.f32.vlgmr.msra.gmra.mxu3 %vm294_vm1, %v496_v9 }
 0x31a   : > { %v1002_v39 = vpop.f32.mrf.mxu3 }
 0x326   : > { %v383_v40 = vpop.f32.mrf.mxu3 }
 0x327   : > { %v386_v41 = vsel %vm320_vm2, %v383_v40, -inf }
 0x328   : > { %387 = vmax.xlane.f32.xlu1 %v386_v41 }
 0x32e   : > { %v520_v42 = vpop.f32.mrf.mxu3 }
 0x32f   : > { %v523_v43 = vsel %vm320_vm2, %v520_v42, -inf }
 0x330   : > { %524 = vmax.xlane.f32.xlu2 %v523_v43 }
 0x341   : > { %401 = vrot.lane.b32.xlu1 %v287_v31, %s860_s25 }
 0x348   : > { %537 = vrot.lane.b32.xlu2 %v287_v31, %s862_s30 }
 0x39b   : > { %v388_v44 = vpop.xlane.xlu1 %387 }
 0x39c   : > { %v389_v45 = vsub.f32 %v383_v40, %v388_v44 }
 0x39e   : > { %v390_v46 = vmul.f32 1.442695, %v389_v45 }
 0x3a0   : > { %785 = vpow2.f32 %v390_v46 }
 0x3a3   : > { %v525_v47 = vpop.xlane.xlu2 %524 }
 0x3a4   : > { %v526_v48 = vsub.f32 %v520_v42, %v525_v47 }
 0x3a6   : > { %v786_v49 = vpop.eup %785  ;;  %v527_v50 = vmul.f32 1.442695, %v526_v48 }
 0x3a7   : > { %v392_v51 = vsel %vm320_vm2, %v786_v49, 0.0 }
 0x3a8   : > { %787 = vpow2.f32 %v527_v50  ;;  %393 = vadd.xlane.f32.xlu0 %v392_v51 }
 0x3ab   : > { %v538_v55 = vpop.permute.xlu2 %537 }
 0x3ae   : > { %v788_v52 = vpop.eup %787 }
 0x3af   : > { %v529_v53 = vsel %vm320_vm2, %v788_v52, 0.0 }
 0x3b0   : > { %530 = vadd.xlane.f32.xlu0 %v529_v53 }
 0x3b3   : > { %v402_v54 = vpop.permute.xlu1 %401 }
 0x3b4   : > { %422 = vmatpush.msrb.mxu2 %v402_v54 }
 0x3b6   : > { %558 = vmatpush.msra.mxu2 %v538_v55 }
 0x3c4   : > { %469 = vrot.lane.b32.xlu0 %v287_v31, %s864_s7  ;;  %s226_s7 = sand.u32 1, %s849_s19  }
 0x41b   : > { %v394_v57 = vpop.xlane.xlu0 %393 }
 0x41c   : > { %789 = vrcp.f32 %v394_v57 }
 0x41d   : > { %791 = vrcp.f32 %v463_v56 }
 0x422   : > { %v790_v58 = vpop.eup %789 }
 0x423   : > { %v396_v59 = vmul.f32 %v790_v58, %v394_v57  ;;  %v531_v60 = vpop.xlane.xlu0 %530  ;;  %v792_v62 = vpop.eup %791 }
 0x424   : > { %793 = vrcp.f32 %v531_v60  ;;  %v465_v2 = vmul.f32 %v792_v62, %v463_v56 }
 0x425   : > { %v397_v61 = vsub.f32 2.0, %v396_v59 }
 0x426   : > { %v466_v5 = vsub.f32 2.0, %v465_v2 }
 0x427   : > { %v398_v63 = vmul.f32 %v790_v58, %v397_v61 }
 0x428   : > { %v467_v8 = vmul.f32 %v792_v62, %v466_v5 }
 0x429   : > { %v399_v0 = vmul.f32 %v786_v49, %v398_v63 }
 0x42a   : > { %v794_v1 = vpop.eup %793  ;;  %v468_v9 = vmul.f32 %v992_v29, %v467_v8  ;;  %v778_v29 = vld [vmem:[%s1089_s3] ss:$0 sm:$0xff] }
 0x42b   : > { %v533_v3 = vmul.f32 %v794_v1, %v531_v60  ;;  %720 = vmatmul.msk.f32.vlgmr.msrb.gmra.mxu2 %vm320_vm2, %v399_v0 }
 0x42d   : > { %v534_v4 = vsub.f32 2.0, %v533_v3 }
 0x42f   : > { %v535_v6 = vmul.f32 %v794_v1, %v534_v4 }
 0x431   : > { %v536_v7 = vmul.f32 %v788_v52, %v535_v6 }
 0x433   : > { %726 = vmatmul.msk.f32.vlgmr.msra.gmra.mxu2 %vm320_vm2, %v536_v7 }
 0x436   : > { %v470_v10 = vpop.permute.xlu0 %469 }
 0x437   : > { %490 = vmatpush.msra.mxu1 %v470_v10 }
 0x438   : > { %723 = vmatmul.msk.f32.vlgmr.msra.gmra.mxu1 %vm320_vm2, %v468_v9 }
 0x4ae   : > { %v424_v11 = vpop.f32.mrf.mxu2 }
 0x4af   : > { %564 = vrot.lane.b32.xlu1 %v424_v11, %s861_s26  ;;  %s710_s26 = sshll.u32 %s226_s7, 3 }
 0x4b5   : > { %v492_v12 = vpop.f32.mrf.mxu1 }
 0x4b6   : > { %568 = vrot.lane.b32.xlu0 %v492_v12, %s863_s6  ;;  %v560_v13 = vpop.f32.mrf.mxu2  ;;  %s729_s6 = sshll.u32 %s917_s22, 3  ;;  %s620_s22 = scalar_lea.sflag [#allocation3], %s226_s7 }
 0x4b7   : > { %572 = vrot.lane.b32.xlu2 %v560_v13, %s865_s23  ;;  %s630_s17 = scalar_lea.hbm %s1091_s5, %s729_s6  ;;  %s228_s23 = scalar_lea.vmem [#allocation2], %s710_s26 }
 0x4b8   : > { %s632_s11 = sshll.u32 %s228_s23, 4  ;;  %s634_s25 = sshll.u32 %s630_s17, 4  ;;  %s633_s11 = int_to_ptr.vmem [resolvable:$true] %s632_s11  ;;  %s635_s25 = int_to_ptr.hbm [resolvable:$true] %s634_s25 }
 0x4b9   : > { %s809_s14 = sshra.s32 %s635_s25, 4  ;;  %s810_s14 = int_to_ptr.hbm [resolvable:$true] %s809_s14 }
 0x4ba   : > { %s811_s30 = scalar_lea.hbm %s810_s14, 8  ;;  %p816_p0 = scmp.lt.s32.totalorder %s810_s14, %s1091_s5 }
 0x4bb   : > { %p812_p11 = scmp.ne.s32.totalorder %s810_s14, %s811_s30  ;;  %p817_p1 = scmp.lt.s32.totalorder %s815_s10, %s811_s30 }
 0x4bd   : > { %p813_p12 = pnand %p812_p11, %p934_p5  ;;  %p818_p2 = por %p817_p1, %p816_p0 }
 0x4bf   : > { %p814_p13 = pneg %p813_p12 }
 0x4c1   : > { %p819_p3 = pnand %p818_p2, %p814_p13 }
 0x511   : > { %v573_v25 = vpop.permute.xlu2 %572 }
 0x521   : > { %v565_v22 = vpop.permute.xlu1 %564 }
 0x522   : > { %v575_v23 = vsel %vm294_vm1, %v1002_v39, %v565_v22 }
 0x528   : > { %v569_v24 = vpop.permute.xlu0 %568 }
 0x529   : > { %v576_v26 = vsel %vm246_vm0, %v575_v23, %v569_v24 }
 0x52a   : > { %v578_v27 = vsel %vm577_vm3, %v576_v26, %v573_v25 }
 0x52b   : > { %727 = vmatmul.msk.f32.vlgmr.msrb.gmra.mxu0 %vm591_vm4, %v578_v27 }
 0x5a8   : > { %v612_v31 = vpop.f32.mrf.mxu0 }
 0x5a9   : > { %v613_v32 = vadd.f32 %v778_v29, %v612_v31 }
 0x5ab   : > { %v617_v33 = vmul.f32 %v616_v30, %v613_v32 }
 0x5ad   : > { %618 = vst.msk [vmem:[%s228_s23] sm:$0xff] %vm246_vm0, %v617_v33 }
 0x5ae   : > { %822 = shalt.err (!%p819_p3)
}
 0x5af   : > { %732 = dma.vmem_to_hbm [thread:$0]  (%p934_p5), %s633_s11, 128, %s635_s25, %s620_s22  }
 0x5b0 PF: > { %p738_p4 = scmp.ge.s32.totalorder %s857_s21, 2  ;;  %s646_s7 = sand.u32 1, %s845_s18  }
 0x5b1   : > { %s647_s12 = scalar_lea.sflag [#allocation3], %s646_s7 }
 0x5b2   : > { %p735_p7 = pnand %p738_p4, %p938_p6 }
 0x5b4   : > { %p736_p8 = pneg %p735_p7 }
 0x5b6   : > { %840 = dma.done.wait (%p736_p8), %s647_s12, 128  }
 0x5b7   : > { %842 = vsyncadd (%p736_p8), %s647_s12, 4294967168  ;;  %p15_p9 = scmp.ge.s32.totalorder %s921_s24, 4   ;;  %s1094_s18 = smov %s849_s19 }
 0x5b8   : > { %s1095_s19 = smov %s853_s20  ;;  %s1096_s20 = smov %s932_s27 }
 0x5b9   : > { %s1097_s21 = smov %s921_s24  ;;  %17 = sbr.rel (!%p15_p9) target bundleno = 3 (0x3), region = 78 }
 0x5be   :  { %653 = vsyncpa [#allocation3], 1 }
 0x5bf   :  { %655 = vsyncpa [#allocation3 + $0x1], 1 }

</bundles_post_ra>
